<compile_context>
chip_gen: v7x
topology: tpu7x:2x2x1
jax: 0.10.0
libtpu: 0.0.40
codegen_flags: <defaults>
</compile_context>

<pallas_src>
import jax
import jax.numpy as jnp
from jax import lax
from jax.experimental import pallas as pl
from jax.experimental.pallas import tpu as pltpu


def lstm_classifier_kernel(tokens_ref, gate_tbl_ref, whh_ref, hid_ref):
    """tokens_ref: (S,) int32, scalar-prefetched into SMEM.
       gate_tbl_ref: (V, 1, 4H) f32 folded token -> (emb@Wih^T + b_ih + b_hh).
       whh_ref: (H, 4H) f32 (gate axis lane-dense).
       hid_ref: (1, out_w) f32 final hidden state, lane-dense zero-padded."""
    seq_len = tokens_ref.shape[0]
    H = whh_ref.shape[0]
    out_w = hid_ref.shape[1]

    # Zero-init the padded output slab up front (off the serial chain); the final
    # h lands in the first H lanes with one masked store at the end.
    if out_w > H:
        hid_ref[...] = jnp.zeros_like(hid_ref)

    whh = whh_ref[...]                                   # (H, 4H), load once

    h = jnp.zeros((1, H), jnp.float32)
    c = jnp.zeros((1, H), jnp.float32)

    # Fully unrolled recurrence: static trip count, tiny live set, static slices.
    for t in range(seq_len):
        # Folded token->pre-gate lookup: one dynamic leading-dim row load from
        # the VMEM-resident table; no embedding gather or input matmul anywhere.
        pre = gate_tbl_ref[tokens_ref[t]]                # (1, 4H)
        gates = pre + jnp.dot(h, whh, preferred_element_type=jnp.float32)
        # Lane-dense nonlinearities: one full-width sigmoid + one tanh (EUP).
        sig = jax.nn.sigmoid(gates)
        th = jnp.tanh(gates)
        i_g = sig[:, 0 * H:1 * H]                        # PyTorch gate order i|f|g|o
        f_g = sig[:, 1 * H:2 * H]
        g_g = th[:, 2 * H:3 * H]
        o_g = sig[:, 3 * H:4 * H]
        c = f_g * c + i_g * g_g
        h = o_g * jnp.tanh(c)

    hid_ref[0:1, 0:H] = h                                # static slice, masked vst


def fold_params(params):
    """One-time init-time preprocessing (hoisted out of the per-call hot path).
    NOTE: must be re-run whenever the underlying params change."""
    emb = params["embedding"].astype(jnp.float32)        # (V, E)
    w_ih = params["w_ih"].astype(jnp.float32)            # (4H, E)
    w_hh = params["w_hh"].astype(jnp.float32)            # (4H, H)
    b = (params["b_ih"] + params["b_hh"]).astype(jnp.float32)   # (4H,)
    gate_table = emb @ w_ih.T + b                        # (V, 4H)
    V, G4 = gate_table.shape
    return {
        "gate_table": gate_table.reshape(V, 1, G4),      # leading-dim gather friendly
        "w_hh_t": w_hh.T,                                # (H, 4H), gate axis lane-dense
    }


def rnn_classifier_forward(tokens, folded):
    """Mirrors RNNClassifier.forward for a 1-D LongTensor of token indices.
    `folded` is the output of fold_params (precomputed once at init)."""
    gate_tbl = folded["gate_table"]                      # (V, 1, 4H)
    whh_t = folded["w_hh_t"]                             # (H, 4H)
    V, _, G4 = gate_tbl.shape
    H = whh_t.shape[0]
    S = tokens.shape[0]
    out_w = ((H + 127) // 128) * 128                     # lane-dense output slab width

    cost = pl.CostEstimate(
        flops=S * (2 * H * G4 + 10 * H),                 # per-step h@Whh + gate math
        transcendentals=S * (2 * G4 + H),                # sigmoid(4H)+tanh(4H)+tanh(H)
        bytes_accessed=4 * (S + V * G4 + H * G4 + out_w),
    )

    hidden_pad = pl.pallas_call(
        lstm_classifier_kernel,
        out_shape=jax.ShapeDtypeStruct((1, out_w), jnp.float32),
        grid_spec=pltpu.PrefetchScalarGridSpec(
            num_scalar_prefetch=1,                       # tokens -> SMEM
            grid=(1,),
            in_specs=[
                pl.BlockSpec((V, 1, G4), lambda i, tok: (0, 0, 0)),
                pl.BlockSpec((H, G4), lambda i, tok: (0, 0)),
            ],
            out_specs=pl.BlockSpec((1, out_w), lambda i, tok: (0, 0)),
        ),
        compiler_params=pltpu.CompilerParams(
            dimension_semantics=("arbitrary",)),
        cost_estimate=cost,
    )(tokens.astype(jnp.int32), gate_tbl, whh_t)

    # torch shapes: hidden_state is (1, 1, H)
    hidden = hidden_pad[:, :H].reshape(1, 1, H)
    # nn.LogSoftmax(dim=0) over a size-1 axis is identically zero.
    log_probs = jnp.zeros_like(hidden)
    return log_probs, hidden


def lstm_reference(x, w_ih, w_hh, b_ih, b_hh, H):
    """Pure-JAX reference of torch.nn.LSTM (1 layer, unidirectional, batch=1)."""
    def step(carry, x_t):
        h, c = carry
        gates = x_t @ w_ih.T + b_ih + h @ w_hh.T + b_hh
        i, f, g, o = jnp.split(gates, 4)
        c_new = jax.nn.sigmoid(f) * c + jax.nn.sigmoid(i) * jnp.tanh(g)
        h_new = jax.nn.sigmoid(o) * jnp.tanh(c_new)
        return (h_new, c_new), None
    (h, _), _ = lax.scan(step, (jnp.zeros(H), jnp.zeros(H)), x)
    return h


def init_params(key, dict_size, embedding_size, hidden_size):
    assert embedding_size == dict_size, (
        "RNNClassifier constructs nn.LSTM(dict_size, hidden); forward only "
        "runs when embedding_size == dict_size")
    k_emb, k_ih, k_hh, k_bih, k_bhh = jax.random.split(key, 5)
    H, E = hidden_size, embedding_size

    def xavier_uniform(k, shape):
        fan_out, fan_in = shape
        a = (6.0 / (fan_in + fan_out)) ** 0.5
        return jax.random.uniform(k, shape, jnp.float32, -a, a)

    bound = 1.0 / (H ** 0.5)
    return {
        "embedding": jax.random.normal(k_emb, (dict_size, E), jnp.float32),  # torch Embedding ~ N(0,1)
        "w_ih": xavier_uniform(k_ih, (4 * H, E)),                            # nn.init.xavier_uniform_
        "w_hh": xavier_uniform(k_hh, (4 * H, H)),                            # nn.init.xavier_uniform_
        "b_ih": jax.random.uniform(k_bih, (4 * H,), jnp.float32, -bound, bound),
        "b_hh": jax.random.uniform(k_bhh, (4 * H,), jnp.float32, -bound, bound),
    }


if __name__ == "__main__":
    dict_size = 32        # vocab size
    embedding_size = 32   # must equal dict_size (see note above)
    hidden_size = 32
    seq_len = 8

    key = jax.random.PRNGKey(0)
    k_params, k_tok = jax.random.split(key)
    params = init_params(k_params, dict_size, embedding_size, hidden_size)
    folded = fold_params(params)          # one-time weight preprocessing (hoisted)
    tokens = jax.random.randint(k_tok, (seq_len,), 0, dict_size, dtype=jnp.int32)

    fwd = jax.jit(rnn_classifier_forward)
    log_probs, hidden = fwd(tokens, folded)
    jax.block_until_ready((log_probs, hidden))

    # Sanity checks against a pure-JAX reference (uses the raw, un-folded params).
    x_emb = jnp.take(params["embedding"], tokens, axis=0)
    h_ref = lstm_reference(x_emb, params["w_ih"], params["w_hh"],
                           params["b_ih"], params["b_hh"], hidden_size)
    assert log_probs.shape == (1, 1, hidden_size)
    assert hidden.shape == (1, 1, hidden_size)
    assert jnp.allclose(hidden.reshape(-1), h_ref, atol=1e-3, rtol=1e-3)
    assert jnp.allclose(log_probs, jnp.zeros_like(log_probs), atol=1e-6)  # LogSoftmax over size-1 dim

    print("KERNEL_OK")
</pallas_src>

<mosaic_0001>
module attributes {stable_mosaic.version = 11 : i64} {
  func.func @lstm_classifier_kernel(%arg0: i32, %arg1: memref<8xi32, #tpu.memory_space<smem>>, %arg2: memref<32x1x128xf32, #tpu.memory_space<vmem>>, %arg3: memref<32x128xf32, #tpu.memory_space<vmem>>, %arg4: memref<1x128xf32, #tpu.memory_space<vmem>>) attributes {dimension_semantics = [#tpu.dimension_semantics<arbitrary>], iteration_bounds = array<i64: 1>, scalar_prefetch = 1 : i64, scratch_operands = 0 : i64, tpu.core_type = #tpu.core_type<tc>, window_params = [{pipeline_mode = #tpu.pipeline_mode<synchronous>, transform_indices = @transform_0, window_bounds = array<i64: 32, 1, 128>}, {pipeline_mode = #tpu.pipeline_mode<synchronous>, transform_indices = @transform_1, window_bounds = array<i64: 32, 128>}, {pipeline_mode = #tpu.pipeline_mode<synchronous>, transform_indices = @transform_2, window_bounds = array<i64: 1, 128>}]} {
    %cst = arith.constant 0.000000e+00 : f32
    %0 = vector.broadcast %cst : f32 to vector<1x128xf32>
    %c0 = arith.constant 0 : index
    %c0_0 = arith.constant 0 : index
    %1 = vector.load %arg4[%c0, %c0_0] : memref<1x128xf32, #tpu.memory_space<vmem>>, vector<1x128xf32>
    tpu.vector_store %arg4[%c0, %c0_0], %0 {strides = array<i32>} : memref<1x128xf32, #tpu.memory_space<vmem>>, vector<1x128xf32>,
    %c0_1 = arith.constant 0 : index
    %c0_2 = arith.constant 0 : index
    %2 = vector.load %arg3[%c0_1, %c0_2] : memref<32x128xf32, #tpu.memory_space<vmem>>, vector<32x128xf32>
    %cst_3 = arith.constant 0.000000e+00 : f32
    %3 = vector.broadcast %cst_3 : f32 to vector<1x32xf32>
    %cst_4 = arith.constant 0.000000e+00 : f32
    %4 = vector.broadcast %cst_4 : f32 to vector<1x32xf32>
    %c0_5 = arith.constant 0 : index
    %5 = memref.load %arg1[%c0_5] : memref<8xi32, #tpu.memory_space<smem>>
    %6 = arith.index_cast %5 : i32 to index
    %c0_6 = arith.constant 0 : index
    %c0_7 = arith.constant 0 : index
    %7 = vector.load %arg2[%6, %c0_6, %c0_7] : memref<32x1x128xf32, #tpu.memory_space<vmem>>, vector<1x1x128xf32>
    %8 = vector.shape_cast %7 : vector<1x1x128xf32> to vector<1x128xf32>
    %cst_8 = arith.constant dense<0.000000e+00> : vector<1x128xf32>
    %9 = tpu.matmul %3, %2, %cst_8 {dimension_numbers = #tpu.dot_dimension_numbers<[1], [0], [0], [1], [0, 0, 1, 1], [], []>} : vector<1x32xf32>, vector<32x128xf32>, vector<1x128xf32> -> vector<1x128xf32>
    %10 = arith.addf %8, %9 : vector<1x128xf32>
    %11 = arith.negf %10 : vector<1x128xf32>
    %12 = math.exp %11 : vector<1x128xf32>
    %cst_9 = arith.constant 1.000000e+00 : f32
    %13 = vector.broadcast %cst_9 : f32 to vector<1x128xf32>
    %14 = arith.addf %13, %12 : vector<1x128xf32>
    %15 = arith.divf %13, %14 : vector<1x128xf32>
    %16 = math.tanh %10 : vector<1x128xf32>
    %17 = vector.extract_strided_slice %15 {offsets = [0, 0], sizes = [1, 32], strides = [1, 1]} : vector<1x128xf32> to vector<1x32xf32>
    %18 = vector.extract_strided_slice %15 {offsets = [0, 32], sizes = [1, 32], strides = [1, 1]} : vector<1x128xf32> to vector<1x32xf32>
    %19 = vector.extract_strided_slice %16 {offsets = [0, 64], sizes = [1, 32], strides = [1, 1]} : vector<1x128xf32> to vector<1x32xf32>
    %20 = vector.extract_strided_slice %15 {offsets = [0, 96], sizes = [1, 32], strides = [1, 1]} : vector<1x128xf32> to vector<1x32xf32>
    %21 = arith.mulf %18, %4 : vector<1x32xf32>
    %22 = arith.mulf %17, %19 : vector<1x32xf32>
    %23 = arith.addf %21, %22 : vector<1x32xf32>
    %24 = math.tanh %23 : vector<1x32xf32>
    %25 = arith.mulf %20, %24 : vector<1x32xf32>
    %c1 = arith.constant 1 : index
    %26 = memref.load %arg1[%c1] : memref<8xi32, #tpu.memory_space<smem>>
    %27 = arith.index_cast %26 : i32 to index
    %c0_10 = arith.constant 0 : index
    %c0_11 = arith.constant 0 : index
    %28 = vector.load %arg2[%27, %c0_10, %c0_11] : memref<32x1x128xf32, #tpu.memory_space<vmem>>, vector<1x1x128xf32>
    %29 = vector.shape_cast %28 : vector<1x1x128xf32> to vector<1x128xf32>
    %cst_12 = arith.constant dense<0.000000e+00> : vector<1x128xf32>
    %30 = tpu.matmul %25, %2, %cst_12 {dimension_numbers = #tpu.dot_dimension_numbers<[1], [0], [0], [1], [0, 0, 1, 1], [], []>} : vector<1x32xf32>, vector<32x128xf32>, vector<1x128xf32> -> vector<1x128xf32>
    %31 = arith.addf %29, %30 : vector<1x128xf32>
    %32 = arith.negf %31 : vector<1x128xf32>
    %33 = math.exp %32 : vector<1x128xf32>
    %cst_13 = arith.constant 1.000000e+00 : f32
    %34 = vector.broadcast %cst_13 : f32 to vector<1x128xf32>
    %35 = arith.addf %34, %33 : vector<1x128xf32>
    %36 = arith.divf %34, %35 : vector<1x128xf32>
    %37 = math.tanh %31 : vector<1x128xf32>
    %38 = vector.extract_strided_slice %36 {offsets = [0, 0], sizes = [1, 32], strides = [1, 1]} : vector<1x128xf32> to vector<1x32xf32>
    %39 = vector.extract_strided_slice %36 {offsets = [0, 32], sizes = [1, 32], strides = [1, 1]} : vector<1x128xf32> to vector<1x32xf32>
    %40 = vector.extract_strided_slice %37 {offsets = [0, 64], sizes = [1, 32], strides = [1, 1]} : vector<1x128xf32> to vector<1x32xf32>
    %41 = vector.extract_strided_slice %36 {offsets = [0, 96], sizes = [1, 32], strides = [1, 1]} : vector<1x128xf32> to vector<1x32xf32>
    %42 = arith.mulf %39, %23 : vector<1x32xf32>
    %43 = arith.mulf %38, %40 : vector<1x32xf32>
    %44 = arith.addf %42, %43 : vector<1x32xf32>
    %45 = math.tanh %44 : vector<1x32xf32>
    %46 = arith.mulf %41, %45 : vector<1x32xf32>
    %c2 = arith.constant 2 : index
    %47 = memref.load %arg1[%c2] : memref<8xi32, #tpu.memory_space<smem>>
    %48 = arith.index_cast %47 : i32 to index
    %c0_14 = arith.constant 0 : index
    %c0_15 = arith.constant 0 : index
    %49 = vector.load %arg2[%48, %c0_14, %c0_15] : memref<32x1x128xf32, #tpu.memory_space<vmem>>, vector<1x1x128xf32>
    %50 = vector.shape_cast %49 : vector<1x1x128xf32> to vector<1x128xf32>
    %cst_16 = arith.constant dense<0.000000e+00> : vector<1x128xf32>
    %51 = tpu.matmul %46, %2, %cst_16 {dimension_numbers = #tpu.dot_dimension_numbers<[1], [0], [0], [1], [0, 0, 1, 1], [], []>} : vector<1x32xf32>, vector<32x128xf32>, vector<1x128xf32> -> vector<1x128xf32>
    %52 = arith.addf %50, %51 : vector<1x128xf32>
    %53 = arith.negf %52 : vector<1x128xf32>
    %54 = math.exp %53 : vector<1x128xf32>
    %cst_17 = arith.constant 1.000000e+00 : f32
    %55 = vector.broadcast %cst_17 : f32 to vector<1x128xf32>
    %56 = arith.addf %55, %54 : vector<1x128xf32>
    %57 = arith.divf %55, %56 : vector<1x128xf32>
    %58 = math.tanh %52 : vector<1x128xf32>
    %59 = vector.extract_strided_slice %57 {offsets = [0, 0], sizes = [1, 32], strides = [1, 1]} : vector<1x128xf32> to vector<1x32xf32>
    %60 = vector.extract_strided_slice %57 {offsets = [0, 32], sizes = [1, 32], strides = [1, 1]} : vector<1x128xf32> to vector<1x32xf32>
    %61 = vector.extract_strided_slice %58 {offsets = [0, 64], sizes = [1, 32], strides = [1, 1]} : vector<1x128xf32> to vector<1x32xf32>
    %62 = vector.extract_strided_slice %57 {offsets = [0, 96], sizes = [1, 32], strides = [1, 1]} : vector<1x128xf32> to vector<1x32xf32>
    %63 = arith.mulf %60, %44 : vector<1x32xf32>
    %64 = arith.mulf %59, %61 : vector<1x32xf32>
    %65 = arith.addf %63, %64 : vector<1x32xf32>
    %66 = math.tanh %65 : vector<1x32xf32>
    %67 = arith.mulf %62, %66 : vector<1x32xf32>
    %c3 = arith.constant 3 : index
    %68 = memref.load %arg1[%c3] : memref<8xi32, #tpu.memory_space<smem>>
    %69 = arith.index_cast %68 : i32 to index
    %c0_18 = arith.constant 0 : index
    %c0_19 = arith.constant 0 : index
    %70 = vector.load %arg2[%69, %c0_18, %c0_19] : memref<32x1x128xf32, #tpu.memory_space<vmem>>, vector<1x1x128xf32>
    %71 = vector.shape_cast %70 : vector<1x1x128xf32> to vector<1x128xf32>
    %cst_20 = arith.constant dense<0.000000e+00> : vector<1x128xf32>
    %72 = tpu.matmul %67, %2, %cst_20 {dimension_numbers = #tpu.dot_dimension_numbers<[1], [0], [0], [1], [0, 0, 1, 1], [], []>} : vector<1x32xf32>, vector<32x128xf32>, vector<1x128xf32> -> vector<1x128xf32>
    %73 = arith.addf %71, %72 : vector<1x128xf32>
    %74 = arith.negf %73 : vector<1x128xf32>
    %75 = math.exp %74 : vector<1x128xf32>
    %cst_21 = arith.constant 1.000000e+00 : f32
    %76 = vector.broadcast %cst_21 : f32 to vector<1x128xf32>
    %77 = arith.addf %76, %75 : vector<1x128xf32>
    %78 = arith.divf %76, %77 : vector<1x128xf32>
    %79 = math.tanh %73 : vector<1x128xf32>
    %80 = vector.extract_strided_slice %78 {offsets = [0, 0], sizes = [1, 32], strides = [1, 1]} : vector<1x128xf32> to vector<1x32xf32>
    %81 = vector.extract_strided_slice %78 {offsets = [0, 32], sizes = [1, 32], strides = [1, 1]} : vector<1x128xf32> to vector<1x32xf32>
    %82 = vector.extract_strided_slice %79 {offsets = [0, 64], sizes = [1, 32], strides = [1, 1]} : vector<1x128xf32> to vector<1x32xf32>
    %83 = vector.extract_strided_slice %78 {offsets = [0, 96], sizes = [1, 32], strides = [1, 1]} : vector<1x128xf32> to vector<1x32xf32>
    %84 = arith.mulf %81, %65 : vector<1x32xf32>
    %85 = arith.mulf %80, %82 : vector<1x32xf32>
    %86 = arith.addf %84, %85 : vector<1x32xf32>
    %87 = math.tanh %86 : vector<1x32xf32>
    %88 = arith.mulf %83, %87 : vector<1x32xf32>
    %c4 = arith.constant 4 : index
    %89 = memref.load %arg1[%c4] : memref<8xi32, #tpu.memory_space<smem>>
    %90 = arith.index_cast %89 : i32 to index
    %c0_22 = arith.constant 0 : index
    %c0_23 = arith.constant 0 : index
    %91 = vector.load %arg2[%90, %c0_22, %c0_23] : memref<32x1x128xf32, #tpu.memory_space<vmem>>, vector<1x1x128xf32>
    %92 = vector.shape_cast %91 : vector<1x1x128xf32> to vector<1x128xf32>
    %cst_24 = arith.constant dense<0.000000e+00> : vector<1x128xf32>
    %93 = tpu.matmul %88, %2, %cst_24 {dimension_numbers = #tpu.dot_dimension_numbers<[1], [0], [0], [1], [0, 0, 1, 1], [], []>} : vector<1x32xf32>, vector<32x128xf32>, vector<1x128xf32> -> vector<1x128xf32>
    %94 = arith.addf %92, %93 : vector<1x128xf32>
    %95 = arith.negf %94 : vector<1x128xf32>
    %96 = math.exp %95 : vector<1x128xf32>
    %cst_25 = arith.constant 1.000000e+00 : f32
    %97 = vector.broadcast %cst_25 : f32 to vector<1x128xf32>
    %98 = arith.addf %97, %96 : vector<1x128xf32>
    %99 = arith.divf %97, %98 : vector<1x128xf32>
    %100 = math.tanh %94 : vector<1x128xf32>
    %101 = vector.extract_strided_slice %99 {offsets = [0, 0], sizes = [1, 32], strides = [1, 1]} : vector<1x128xf32> to vector<1x32xf32>
    %102 = vector.extract_strided_slice %99 {offsets = [0, 32], sizes = [1, 32], strides = [1, 1]} : vector<1x128xf32> to vector<1x32xf32>
    %103 = vector.extract_strided_slice %100 {offsets = [0, 64], sizes = [1, 32], strides = [1, 1]} : vector<1x128xf32> to vector<1x32xf32>
    %104 = vector.extract_strided_slice %99 {offsets = [0, 96], sizes = [1, 32], strides = [1, 1]} : vector<1x128xf32> to vector<1x32xf32>
    %105 = arith.mulf %102, %86 : vector<1x32xf32>
    %106 = arith.mulf %101, %103 : vector<1x32xf32>
    %107 = arith.addf %105, %106 : vector<1x32xf32>
    %108 = math.tanh %107 : vector<1x32xf32>
    %109 = arith.mulf %104, %108 : vector<1x32xf32>
    %c5 = arith.constant 5 : index
    %110 = memref.load %arg1[%c5] : memref<8xi32, #tpu.memory_space<smem>>
    %111 = arith.index_cast %110 : i32 to index
    %c0_26 = arith.constant 0 : index
    %c0_27 = arith.constant 0 : index
    %112 = vector.load %arg2[%111, %c0_26, %c0_27] : memref<32x1x128xf32, #tpu.memory_space<vmem>>, vector<1x1x128xf32>
    %113 = vector.shape_cast %112 : vector<1x1x128xf32> to vector<1x128xf32>
    %cst_28 = arith.constant dense<0.000000e+00> : vector<1x128xf32>
    %114 = tpu.matmul %109, %2, %cst_28 {dimension_numbers = #tpu.dot_dimension_numbers<[1], [0], [0], [1], [0, 0, 1, 1], [], []>} : vector<1x32xf32>, vector<32x128xf32>, vector<1x128xf32> -> vector<1x128xf32>
    %115 = arith.addf %113, %114 : vector<1x128xf32>
    %116 = arith.negf %115 : vector<1x128xf32>
    %117 = math.exp %116 : vector<1x128xf32>
    %cst_29 = arith.constant 1.000000e+00 : f32
    %118 = vector.broadcast %cst_29 : f32 to vector<1x128xf32>
    %119 = arith.addf %118, %117 : vector<1x128xf32>
    %120 = arith.divf %118, %119 : vector<1x128xf32>
    %121 = math.tanh %115 : vector<1x128xf32>
    %122 = vector.extract_strided_slice %120 {offsets = [0, 0], sizes = [1, 32], strides = [1, 1]} : vector<1x128xf32> to vector<1x32xf32>
    %123 = vector.extract_strided_slice %120 {offsets = [0, 32], sizes = [1, 32], strides = [1, 1]} : vector<1x128xf32> to vector<1x32xf32>
    %124 = vector.extract_strided_slice %121 {offsets = [0, 64], sizes = [1, 32], strides = [1, 1]} : vector<1x128xf32> to vector<1x32xf32>
    %125 = vector.extract_strided_slice %120 {offsets = [0, 96], sizes = [1, 32], strides = [1, 1]} : vector<1x128xf32> to vector<1x32xf32>
    %126 = arith.mulf %123, %107 : vector<1x32xf32>
    %127 = arith.mulf %122, %124 : vector<1x32xf32>
    %128 = arith.addf %126, %127 : vector<1x32xf32>
    %129 = math.tanh %128 : vector<1x32xf32>
    %130 = arith.mulf %125, %129 : vector<1x32xf32>
    %c6 = arith.constant 6 : index
    %131 = memref.load %arg1[%c6] : memref<8xi32, #tpu.memory_space<smem>>
    %132 = arith.index_cast %131 : i32 to index
    %c0_30 = arith.constant 0 : index
    %c0_31 = arith.constant 0 : index
    %133 = vector.load %arg2[%132, %c0_30, %c0_31] : memref<32x1x128xf32, #tpu.memory_space<vmem>>, vector<1x1x128xf32>
    %134 = vector.shape_cast %133 : vector<1x1x128xf32> to vector<1x128xf32>
    %cst_32 = arith.constant dense<0.000000e+00> : vector<1x128xf32>
    %135 = tpu.matmul %130, %2, %cst_32 {dimension_numbers = #tpu.dot_dimension_numbers<[1], [0], [0], [1], [0, 0, 1, 1], [], []>} : vector<1x32xf32>, vector<32x128xf32>, vector<1x128xf32> -> vector<1x128xf32>
    %136 = arith.addf %134, %135 : vector<1x128xf32>
    %137 = arith.negf %136 : vector<1x128xf32>
    %138 = math.exp %137 : vector<1x128xf32>
    %cst_33 = arith.constant 1.000000e+00 : f32
    %139 = vector.broadcast %cst_33 : f32 to vector<1x128xf32>
    %140 = arith.addf %139, %138 : vector<1x128xf32>
    %141 = arith.divf %139, %140 : vector<1x128xf32>
    %142 = math.tanh %136 : vector<1x128xf32>
    %143 = vector.extract_strided_slice %141 {offsets = [0, 0], sizes = [1, 32], strides = [1, 1]} : vector<1x128xf32> to vector<1x32xf32>
    %144 = vector.extract_strided_slice %141 {offsets = [0, 32], sizes = [1, 32], strides = [1, 1]} : vector<1x128xf32> to vector<1x32xf32>
    %145 = vector.extract_strided_slice %142 {offsets = [0, 64], sizes = [1, 32], strides = [1, 1]} : vector<1x128xf32> to vector<1x32xf32>
    %146 = vector.extract_strided_slice %141 {offsets = [0, 96], sizes = [1, 32], strides = [1, 1]} : vector<1x128xf32> to vector<1x32xf32>
    %147 = arith.mulf %144, %128 : vector<1x32xf32>
    %148 = arith.mulf %143, %145 : vector<1x32xf32>
    %149 = arith.addf %147, %148 : vector<1x32xf32>
    %150 = math.tanh %149 : vector<1x32xf32>
    %151 = arith.mulf %146, %150 : vector<1x32xf32>
    %c7 = arith.constant 7 : index
    %152 = memref.load %arg1[%c7] : memref<8xi32, #tpu.memory_space<smem>>
    %153 = arith.index_cast %152 : i32 to index
    %c0_34 = arith.constant 0 : index
    %c0_35 = arith.constant 0 : index
    %154 = vector.load %arg2[%153, %c0_34, %c0_35] : memref<32x1x128xf32, #tpu.memory_space<vmem>>, vector<1x1x128xf32>
    %155 = vector.shape_cast %154 : vector<1x1x128xf32> to vector<1x128xf32>
    %cst_36 = arith.constant dense<0.000000e+00> : vector<1x128xf32>
    %156 = tpu.matmul %151, %2, %cst_36 {dimension_numbers = #tpu.dot_dimension_numbers<[1], [0], [0], [1], [0, 0, 1, 1], [], []>} : vector<1x32xf32>, vector<32x128xf32>, vector<1x128xf32> -> vector<1x128xf32>
    %157 = arith.addf %155, %156 : vector<1x128xf32>
    %158 = arith.negf %157 : vector<1x128xf32>
    %159 = math.exp %158 : vector<1x128xf32>
    %cst_37 = arith.constant 1.000000e+00 : f32
    %160 = vector.broadcast %cst_37 : f32 to vector<1x128xf32>
    %161 = arith.addf %160, %159 : vector<1x128xf32>
    %162 = arith.divf %160, %161 : vector<1x128xf32>
    %163 = math.tanh %157 : vector<1x128xf32>
    %164 = vector.extract_strided_slice %162 {offsets = [0, 0], sizes = [1, 32], strides = [1, 1]} : vector<1x128xf32> to vector<1x32xf32>
    %165 = vector.extract_strided_slice %162 {offsets = [0, 32], sizes = [1, 32], strides = [1, 1]} : vector<1x128xf32> to vector<1x32xf32>
    %166 = vector.extract_strided_slice %163 {offsets = [0, 64], sizes = [1, 32], strides = [1, 1]} : vector<1x128xf32> to vector<1x32xf32>
    %167 = vector.extract_strided_slice %162 {offsets = [0, 96], sizes = [1, 32], strides = [1, 1]} : vector<1x128xf32> to vector<1x32xf32>
    %168 = arith.mulf %165, %149 : vector<1x32xf32>
    %169 = arith.mulf %164, %166 : vector<1x32xf32>
    %170 = arith.addf %168, %169 : vector<1x32xf32>
    %171 = math.tanh %170 : vector<1x32xf32>
    %172 = arith.mulf %167, %171 : vector<1x32xf32>
    %c0_38 = arith.constant 0 : index
    %c0_39 = arith.constant 0 : index
    %173 = vector.load %arg4[%c0_38, %c0_39] : memref<1x128xf32, #tpu.memory_space<vmem>>, vector<1x32xf32>
    tpu.vector_store %arg4[%c0_38, %c0_39], %172 {strides = array<i32>} : memref<1x128xf32, #tpu.memory_space<vmem>>, vector<1x32xf32>,
    return
  }
  func.func @transform_0(%arg0: i32, %arg1: memref<8xi32, #tpu.memory_space<smem>>) -> (i32, i32, i32) {
    %c0_i32 = arith.constant 0 : i32
    %c0_i32_0 = arith.constant 0 : i32
    %c0_i32_1 = arith.constant 0 : i32
    %c0_i32_2 = arith.constant 0 : i32
    return %c0_i32, %c0_i32_0, %c0_i32_1 : i32, i32, i32
  }
  func.func @transform_1(%arg0: i32, %arg1: memref<8xi32, #tpu.memory_space<smem>>) -> (i32, i32) {
    %c0_i32 = arith.constant 0 : i32
    %c0_i32_0 = arith.constant 0 : i32
    %c0_i32_1 = arith.constant 0 : i32
    return %c0_i32, %c0_i32_0 : i32, i32
  }
  func.func @transform_2(%arg0: i32, %arg1: memref<8xi32, #tpu.memory_space<smem>>) -> (i32, i32) {
    %c0_i32 = arith.constant 0 : i32
    %c0_i32_0 = arith.constant 0 : i32
    %c0_i32_1 = arith.constant 0 : i32
    return %c0_i32, %c0_i32_0 : i32, i32
  }
}

</mosaic_0001>

<bundles_post_ra>
// kernel: rnn_classifier_forward.1
= control target key start
LH: loop header
LB: loop body
LE: loop exit
PB: predicated region body
PF: predicated region fallthrough
CT: control target
= control target key end

     0   :  { %s1435_s0 = inlined_call_operand.hbm [shape: s32[8], index: 0, kind: input, shape index: {}]   ;;  %s1436_s1 = inlined_call_operand.hbm [shape: f32[32,1,128], index: 1, kind: input, shape index: {}]   ;;  %s1437_s2 = inlined_call_operand.hbm [shape: f32[32,128], index: 2, kind: input, shape index: {}]   ;;  %s1438_s3 = inlined_call_operand.vmem [shape: f32[1,128], index: 3, kind: output, shape index: {}]  }
   0x1   :  { %s1198_s14 = scalar_lea.hbm %s1435_s0, 16 }
   0x2   :  { %p1199_p0 = scmp.ne.s32.totalorder %s1435_s0, %s1198_s14  ;;  %p1202_p1 = scmp.lt.u32.totalorder %s1198_s14, %s1435_s0 }
   0x4   :  { %p1204_p2 = pnand %p1202_p1, %p1199_p0 }
   0x6   :  { %1207 = shalt.err (!%p1204_p2)  }
   0x7   :  { %s1258_s19 = smov [#allocation3]  }
   0x8   :  { %9 = dma.hbm_to_smem %s1435_s0, 16, %s1258_s19, [#allocation2] }
   0x9   :  { %1252 = dma.done.wait [#allocation2], 16 }
   0xa   :  { %1253 = vsyncadd [#allocation2], 4294967280 }
   0xb   :  { %11 = sfence }
   0xc   :  { %12 = vsyncpa [#allocation5], 0 }
   0xd   :  { %13 = vsyncpa [#allocation7], 0  ;;  %s1259_s22 = smov [#allocation4]   ;;  %s1208_s26 = scalar_lea.hbm %s1436_s1, 512 }
   0xe   :  { %s19_s23 = sshll.u32 %s1259_s22, 4  ;;  %p1209_p3 = scmp.ne.s32.totalorder %s1436_s1, %s1208_s26  ;;  %s20_s23 = int_to_ptr.vmem [resolvable:$true] %s19_s23 }
   0xf   :  { %p1212_p4 = scmp.lt.u32.totalorder %s1208_s26, %s1436_s1 }
  0x11   :  { %p1214_p5 = pnand %p1212_p4, %p1209_p3 }
  0x13   :  { %1217 = shalt.err (!%p1214_p5)
}
  0x14   :  { %s1218_s0 = scalar_lea.vmem %s20_s23, 512  ;;  %p1223_p7 = scmp.lt.s32.totalorder %s20_s23, %s20_s23 }
  0x15   :  { %p1219_p6 = scmp.ne.s32.totalorder %s20_s23, %s1218_s0  ;;  %p1224_p8 = scmp.lt.s32.totalorder %s1218_s0, %s1218_s0 }
  0x17   :  { %p1225_p9 = por %p1224_p8, %p1223_p7 }
  0x19   :  { %p1226_p10 = pnand %p1225_p9, %p1219_p6 }
  0x1b   :  { %1229 = shalt.err (!%p1226_p10)
}
  0x1c   :  { %s1260_s4 = smov 16   ;;  %s1261_s5 = smov 1  }
  0x1d   :  { %25 = dma.hbm_to_vmem [thread:$0]  %s1436_s1, 512, %s20_s23, [#allocation5], %s1260_s4, %s1260_s4, %s1261_s5  }
  0x1e   :  { %s1262_s8 = smov [#allocation6]   ;;  %s1230_s12 = scalar_lea.hbm %s1437_s2, 512 }
  0x1f   :  { %s31_s9 = sshll.u32 %s1262_s8, 4  ;;  %p1231_p11 = scmp.ne.s32.totalorder %s1437_s2, %s1230_s12  ;;  %s32_s9 = int_to_ptr.vmem [resolvable:$true] %s31_s9 }
  0x20   :  { %p1234_p12 = scmp.lt.u32.totalorder %s1230_s12, %s1437_s2 }
  0x22   :  { %p1236_p13 = pnand %p1234_p12, %p1231_p11 }
  0x24   :  { %1239 = shalt.err (!%p1236_p13)
}
  0x25   :  { %s1240_s17 = scalar_lea.vmem %s32_s9, 512  ;;  %p1245_p1 = scmp.lt.s32.totalorder %s32_s9, %s32_s9 }
  0x26   :  { %p1241_p0 = scmp.ne.s32.totalorder %s32_s9, %s1240_s17  ;;  %p1246_p2 = scmp.lt.s32.totalorder %s1240_s17, %s1240_s17 }
  0x28   :  { %p1247_p3 = por %p1246_p2, %p1245_p1 }
  0x2a   :  { %p1248_p4 = pnand %p1247_p3, %p1241_p0 }
  0x2c   :  { %1251 = shalt.err (!%p1248_p4)
}
  0x2d   :  { %s1263_s1 = smov 128   ;;  %s1264_s18 = smov 8  }
  0x2e   :  { %37 = dma.hbm_to_vmem [thread:$0]  %s1437_s2, 512, %s32_s9, [#allocation7], %s1263_s1, %s1263_s1, %s1264_s18  }
  0x2f   :  { %1254 = dma.done.wait [#allocation5], 512  }
  0x30   :  { %1255 = vsyncadd [#allocation5], 4294966784 }
  0x31   :  { %1256 = dma.done.wait [#allocation7], 512  }
  0x32   :  { %1257 = vsyncadd [#allocation7], 4294966784  ;;  %v1265_v0 = vmov 0.0|0.0   ;;  %vm1266_vm0 = vmmov 0   ;;  %v1267_v1 = vmov 0.0   ;;  %v45_v2 = vld [vmem:[#allocation6] sm:$0xff]  ;;  %v155_v23 = vlaneseq }
  0x33   :  { %1074 = vmatprep.subr.bf16.mxu0 %v1265_v0  ;;  %994 = vmatprep.mubr.msk.f32.mxu0 %vm1266_vm0, %v1267_v1  ;;  %44 = vst [vmem:[%s1438_s3] sm:$0x1] %v1267_v1  ;;  %v46_v3 = vld [vmem:[#allocation6 + $0x8] sm:$0xff]  ;;  %v47_v4 = vld [vmem:[#allocation6 + $0x10] sm:$0xff]  ;;  %v48_v6 = vld [vmem:[#allocation6 + $0x18] sm:$0xff]  ;;  %s49_s2 = sld [smem:[#allocation3]]  ;;  %s1268_s24 = smov 64  }
  0x34   :  { %1080 = vmatprep.subr.bf16.mxu1 %v1265_v0  ;;  %1005 = vmatprep.mubr.msk.f32.mxu1 %vm1266_vm0, %v1267_v1  ;;  %v1336_v5 = vpack.c.bf16 %v46_v3, %v45_v2  ;;  %v1339_v7 = vpack.c.bf16 %v48_v6, %v47_v4  ;;  %s1269_s25 = smov 32   ;;  %v156_v24 = vshrl.u32 %v155_v23, 7  ;;  %vm52_vm1 = vcmask 261120   ;;  %s925_s26 = sld [smem:[#allocation3 + $0x1]] }
  0x35   :  { %s928_s28 = sld [smem:[#allocation3 + $0x2]]  ;;  %s931_s30 = sld [smem:[#allocation3 + $0x3]]  ;;  %vm908_vm2 = vcmask 253952  }
  0x36   :  { %1076 = vmatpush3.bf16.msra.mxu0 %v1336_v5  ;;  %1082 = vmatpush3.bf16.msra.mxu1 %v1336_v5  ;;  %v1358_v25 = vsub.s32 0, %v156_v24  ;;  %s934_s4 = sld [smem:[#allocation3 + $0x4]]  ;;  %s937_s6 = sld [smem:[#allocation3 + $0x5]] }
  0x37   :  { %1077 = vmatprep.subr.bf16.mxu0 %v1265_v0  ;;  %1083 = vmatprep.subr.bf16.mxu1 %v1265_v0  ;;  %s940_s8 = sld [smem:[#allocation3 + $0x6]]  ;;  %s943_s10 = sld [smem:[#allocation3 + $0x7]] }
  0x39   :  { %s50_s23 = scalar_lea.vmem [#allocation4], %s49_s2 }
  0x3a   :  { %1079 = vmatpush3.bf16.msra.mxu0 %v1339_v7  ;;  %1085 = vmatpush3.bf16.msra.mxu1 %v1339_v7  ;;  %v51_v8 = vld [vmem:[%s50_s23] sm:$0x1]  ;;  %s152_s27 = scalar_lea.vmem [#allocation4], %s925_s26 }
  0x3b   :  { %1086 = vmatprep.subr.bf16.mxu0 %v1265_v0  ;;  %1092 = vmatprep.subr.bf16.mxu1 %v1265_v0  ;;  %v153_v30 = vld [vmem:[%s152_s27] sm:$0x1]  ;;  %s259_s29 = scalar_lea.vmem [#allocation4], %s928_s28  ;;  %s366_s0 = scalar_lea.vmem [#allocation4], %s931_s30 }
  0x3c   :  { %v260_v49 = vld [vmem:[%s259_s29] sm:$0x1]  ;;  %s473_s5 = scalar_lea.vmem [#allocation4], %s934_s4  ;;  %s580_s7 = scalar_lea.vmem [#allocation4], %s937_s6 }
  0x3d   :  { %995 = vmatmul.mubr.f32.vlgmr.msra.gmra.mrb[0].mxu0 %v1267_v1  ;;  %s687_s9 = scalar_lea.vmem [#allocation4], %s940_s8  ;;  %s794_s11 = scalar_lea.vmem [#allocation4], %s943_s10 }
  0x3e   :  { %1088 = vmatpush3.bf16.msra.mxu0 %v1336_v5  ;;  %1016 = vmatprep.mubr.msk.f32.mxu0 %vm1266_vm0, %v1267_v1 }
  0x3f   :  { %1089 = vmatprep.subr.bf16.mxu0 %v1265_v0 }
  0x42   :  { %1091 = vmatpush3.bf16.msra.mxu0 %v1339_v7 }
  0x43   :  { %1098 = vmatprep.subr.bf16.mxu0 %v1265_v0 }
 0x110   :  { %v122_v9 = vpop.f32.mrb[0].mxu0 }
 0x111   :  { %v126_v10 = vadd.f32 %v122_v9, %v51_v8  ;;  %v996_v11 = vpop.f32.mrb[1].mxu0  ;;  %v367_v8 = vld [vmem:[%s366_s0] sm:$0x1] }
 0x113   :  { %1134 = vtanh.f32 %v126_v10  ;;  %v924_v13 = vmul.f32 -1.442695, %v126_v10 }
 0x115   :  { %1136 = vpow2.f32 %v924_v13 }
 0x11d   :  { %v1135_v12 = vpop.eup %1134 }
 0x11e   :  { %136 = vrot.lane.b32.xlu0 %v1135_v12, %s1268_s24 }
 0x11f   :  { %v1137_v14 = vpop.eup %1136 }
 0x120   :  { %v130_v15 = vadd.f32 1.0, %v1137_v14 }
 0x122   :  { %1138 = vrcp.f32 %v130_v15 }
 0x12c   :  { %v1139_v16 = vpop.eup %1138 }
 0x12d   :  { %v134_v19 = vmul.f32 0.0, %v1139_v16 }
 0x190   :  { %v137_v17 = vpop.permute.xlu0 %136 }
 0x191   :  { %v139_v18 = vmul.f32 %v1139_v16, %v137_v17 }
 0x193   :  { %141 = vrot.lane.b32.xlu0 %v139_v18, %s1269_s25 }
 0x205   :  { %v142_v20 = vpop.permute.xlu0 %141 }
 0x206   :  { %v144_v21 = vadd.f32 %v142_v20, %v134_v19 }
 0x208   :  { %1140 = vtanh.f32 %v144_v21 }
 0x212   :  { %v1141_v22 = vpop.eup %1140 }
 0x213   :  { %147 = vrot.lane.b32.xlu1 %v1141_v22, %s1268_s24 }
 0x285   :  { %v148_v26 = vpop.permute.xlu1 %147 }
 0x286   :  { %v150_v27 = vmul.f32 %v1139_v16, %v148_v26 }
 0x288   :  { %v158_v28 = vrot.slane %v150_v27, %v1358_v25 }
 0x28a   :  { %159 = vrot.lane.b32.xlu1 %v158_v28, %s1269_s25  ;;  %v474_v28 = vld [vmem:[%s473_s5] sm:$0x1] }
 0x2fc   :  { %v160_v29 = vpop.permute.xlu1 %159 }
 0x2fd   :  { %1006 = vmatmul.mubr.msk.f32.vlgmr.msra.gmra.mrb[0].mxu1 %vm52_vm1, %v160_v29 }
 0x2fe   :  { %1094 = vmatpush3.bf16.msra.mxu1 %v1336_v5  ;;  %1027 = vmatprep.mubr.msk.f32.mxu1 %vm1266_vm0, %v1267_v1 }
 0x2ff   :  { %1095 = vmatprep.subr.bf16.mxu1 %v1265_v0 }
 0x302   :  { %1097 = vmatpush3.bf16.msra.mxu1 %v1339_v7 }
 0x303   :  { %1104 = vmatprep.subr.bf16.mxu1 %v1265_v0 }
 0x3d0   :  { %v229_v31 = vpop.f32.mrb[0].mxu1 }
 0x3d1   :  { %v233_v32 = vadd.f32 %v229_v31, %v153_v30  ;;  %v1007_v33 = vpop.f32.mrb[1].mxu1 }
 0x3d3   :  { %1142 = vtanh.f32 %v233_v32  ;;  %v927_v35 = vmul.f32 -1.442695, %v233_v32 }
 0x3d5   :  { %1144 = vpow2.f32 %v927_v35 }
 0x3dd   :  { %v1143_v34 = vpop.eup %1142 }
 0x3de   :  { %243 = vrot.lane.b32.xlu0 %v1143_v34, %s1268_s24 }
 0x3df   :  { %v1145_v36 = vpop.eup %1144 }
 0x3e0   :  { %v237_v37 = vadd.f32 1.0, %v1145_v36 }
 0x3e2   :  { %1146 = vrcp.f32 %v237_v37 }
 0x3ec   :  { %v1147_v38 = vpop.eup %1146 }
 0x3ed   :  { %v241_v41 = vmul.f32 %v1147_v38, %v144_v21 }
 0x450   :  { %v244_v39 = vpop.permute.xlu0 %243 }
 0x451   :  { %v246_v40 = vmul.f32 %v1147_v38, %v244_v39 }
 0x453   :  { %248 = vrot.lane.b32.xlu1 %v246_v40, %s1269_s25 }
 0x4c5   :  { %v249_v42 = vpop.permute.xlu1 %248 }
 0x4c6   :  { %v251_v43 = vadd.f32 %v249_v42, %v241_v41 }
 0x4c8   :  { %1148 = vtanh.f32 %v251_v43 }
 0x4d2   :  { %v1149_v44 = vpop.eup %1148 }
 0x4d3   :  { %254 = vrot.lane.b32.xlu0 %v1149_v44, %s1268_s24 }
 0x545   :  { %v255_v45 = vpop.permute.xlu0 %254 }
 0x546   :  { %v257_v46 = vmul.f32 %v1147_v38, %v255_v45 }
 0x548   :  { %v265_v47 = vrot.slane %v257_v46, %v1358_v25 }
 0x54a   :  { %266 = vrot.lane.b32.xlu1 %v265_v47, %s1269_s25  ;;  %v581_v47 = vld [vmem:[%s580_s7] sm:$0x1] }
 0x5bc   :  { %v267_v48 = vpop.permute.xlu1 %266 }
 0x5bd   :  { %1017 = vmatmul.mubr.msk.f32.vlgmr.msra.gmra.mrb[2].mxu0 %vm52_vm1, %v267_v48 }
 0x5be   :  { %1100 = vmatpush3.bf16.msra.mxu0 %v1336_v5  ;;  %1038 = vmatprep.mubr.msk.f32.mxu0 %vm1266_vm0, %v1267_v1 }
 0x5bf   :  { %1101 = vmatprep.subr.bf16.mxu0 %v1265_v0 }
 0x5c2   :  { %1103 = vmatpush3.bf16.msra.mxu0 %v1339_v7 }
 0x5c3   :  { %1110 = vmatprep.subr.bf16.mxu0 %v1265_v0 }
 0x690   :  { %v336_v50 = vpop.f32.mrb[2].mxu0 }
 0x691   :  { %v340_v51 = vadd.f32 %v336_v50, %v260_v49  ;;  %v1018_v52 = vpop.f32.mrb[3].mxu0 }
 0x693   :  { %1150 = vtanh.f32 %v340_v51  ;;  %v930_v54 = vmul.f32 -1.442695, %v340_v51 }
 0x695   :  { %1152 = vpow2.f32 %v930_v54 }
 0x69d   :  { %v1151_v53 = vpop.eup %1150 }
 0x69e   :  { %350 = vrot.lane.b32.xlu0 %v1151_v53, %s1268_s24 }
 0x69f   :  { %v1153_v55 = vpop.eup %1152 }
 0x6a0   :  { %v344_v56 = vadd.f32 1.0, %v1153_v55 }
 0x6a2   :  { %1154 = vrcp.f32 %v344_v56 }
 0x6ac   :  { %v1155_v57 = vpop.eup %1154 }
 0x6ad   :  { %v348_v60 = vmul.f32 %v1155_v57, %v251_v43 }
 0x710   :  { %v351_v58 = vpop.permute.xlu0 %350 }
 0x711   :  { %v353_v59 = vmul.f32 %v1155_v57, %v351_v58 }
 0x713   :  { %355 = vrot.lane.b32.xlu1 %v353_v59, %s1269_s25 }
 0x785   :  { %v356_v61 = vpop.permute.xlu1 %355 }
 0x786   :  { %v358_v62 = vadd.f32 %v356_v61, %v348_v60 }
 0x788   :  { %1156 = vtanh.f32 %v358_v62 }
 0x792   :  { %v1157_v63 = vpop.eup %1156 }
 0x793   :  { %361 = vrot.lane.b32.xlu0 %v1157_v63, %s1268_s24 }
 0x805   :  { %v362_v2 = vpop.permute.xlu0 %361 }
 0x806   :  { %v364_v3 = vmul.f32 %v1155_v57, %v362_v2 }
 0x808   :  { %v372_v4 = vrot.slane %v364_v3, %v1358_v25 }
 0x80a   :  { %373 = vrot.lane.b32.xlu1 %v372_v4, %s1269_s25 }
 0x87c   :  { %v374_v6 = vpop.permute.xlu1 %373 }
 0x87d   :  { %1028 = vmatmul.mubr.msk.f32.vlgmr.msra.gmra.mrb[2].mxu1 %vm52_vm1, %v374_v6 }
 0x87e   :  { %1106 = vmatpush3.bf16.msra.mxu1 %v1336_v5  ;;  %1049 = vmatprep.mubr.msk.f32.mxu1 %vm1266_vm0, %v1267_v1 }
 0x87f   :  { %1107 = vmatprep.subr.bf16.mxu1 %v1265_v0 }
 0x882   :  { %1109 = vmatpush3.bf16.msra.mxu1 %v1339_v7 }
 0x883   :  { %1116 = vmatprep.subr.bf16.mxu1 %v1265_v0 }
 0x950   :  { %v443_v9 = vpop.f32.mrb[2].mxu1 }
 0x951   :  { %v447_v10 = vadd.f32 %v443_v9, %v367_v8  ;;  %v1029_v11 = vpop.f32.mrb[3].mxu1 }
 0x953   :  { %1158 = vtanh.f32 %v447_v10  ;;  %v933_v13 = vmul.f32 -1.442695, %v447_v10 }
 0x955   :  { %1160 = vpow2.f32 %v933_v13 }
 0x95d   :  { %v1159_v12 = vpop.eup %1158 }
 0x95e   :  { %457 = vrot.lane.b32.xlu0 %v1159_v12, %s1268_s24 }
 0x95f   :  { %v1161_v14 = vpop.eup %1160 }
 0x960   :  { %v451_v15 = vadd.f32 1.0, %v1161_v14 }
 0x962   :  { %1162 = vrcp.f32 %v451_v15 }
 0x96c   :  { %v1163_v16 = vpop.eup %1162 }
 0x96d   :  { %v455_v19 = vmul.f32 %v1163_v16, %v358_v62  ;;  %v688_v62 = vld [vmem:[%s687_s9] sm:$0x1] }
 0x9d0   :  { %v458_v17 = vpop.permute.xlu0 %457 }
 0x9d1   :  { %v460_v18 = vmul.f32 %v1163_v16, %v458_v17 }
 0x9d3   :  { %462 = vrot.lane.b32.xlu1 %v460_v18, %s1269_s25 }
 0xa45   :  { %v463_v20 = vpop.permute.xlu1 %462 }
 0xa46   :  { %v465_v21 = vadd.f32 %v463_v20, %v455_v19 }
 0xa48   :  { %1164 = vtanh.f32 %v465_v21 }
 0xa52   :  { %v1165_v22 = vpop.eup %1164 }
 0xa53   :  { %468 = vrot.lane.b32.xlu0 %v1165_v22, %s1268_s24 }
 0xac5   :  { %v469_v23 = vpop.permute.xlu0 %468 }
 0xac6   :  { %v471_v24 = vmul.f32 %v1163_v16, %v469_v23 }
 0xac8   :  { %v479_v26 = vrot.slane %v471_v24, %v1358_v25 }
 0xaca   :  { %480 = vrot.lane.b32.xlu1 %v479_v26, %s1269_s25 }
 0xb3c   :  { %v481_v27 = vpop.permute.xlu1 %480 }
 0xb3d   :  { %1039 = vmatmul.mubr.msk.f32.vlgmr.msra.gmra.mrb[4].mxu0 %vm52_vm1, %v481_v27 }
 0xb3e   :  { %1112 = vmatpush3.bf16.msra.mxu0 %v1336_v5  ;;  %1060 = vmatprep.mubr.msk.f32.mxu0 %vm1266_vm0, %v1267_v1 }
 0xb3f   :  { %1113 = vmatprep.subr.bf16.mxu0 %v1265_v0 }
 0xb42   :  { %1115 = vmatpush3.bf16.msra.mxu0 %v1339_v7 }
 0xc10   :  { %v550_v29 = vpop.f32.mrb[4].mxu0 }
 0xc11   :  { %v554_v30 = vadd.f32 %v550_v29, %v474_v28  ;;  %v1040_v31 = vpop.f32.mrb[5].mxu0 }
 0xc13   :  { %1166 = vtanh.f32 %v554_v30  ;;  %v936_v33 = vmul.f32 -1.442695, %v554_v30 }
 0xc15   :  { %1168 = vpow2.f32 %v936_v33 }
 0xc1d   :  { %v1167_v32 = vpop.eup %1166 }
 0xc1e   :  { %564 = vrot.lane.b32.xlu0 %v1167_v32, %s1268_s24 }
 0xc1f   :  { %v1169_v34 = vpop.eup %1168 }
 0xc20   :  { %v558_v35 = vadd.f32 1.0, %v1169_v34 }
 0xc22   :  { %1170 = vrcp.f32 %v558_v35 }
 0xc2c   :  { %v1171_v36 = vpop.eup %1170 }
 0xc2d   :  { %v562_v39 = vmul.f32 %v1171_v36, %v465_v21  ;;  %v795_v21 = vld [vmem:[%s794_s11] sm:$0x1] }
 0xc90   :  { %v565_v37 = vpop.permute.xlu0 %564 }
 0xc91   :  { %v567_v38 = vmul.f32 %v1171_v36, %v565_v37 }
 0xc93   :  { %569 = vrot.lane.b32.xlu1 %v567_v38, %s1269_s25 }
 0xd05   :  { %v570_v40 = vpop.permute.xlu1 %569 }
 0xd06   :  { %v572_v41 = vadd.f32 %v570_v40, %v562_v39 }
 0xd08   :  { %1172 = vtanh.f32 %v572_v41 }
 0xd12   :  { %v1173_v42 = vpop.eup %1172 }
 0xd13   :  { %575 = vrot.lane.b32.xlu0 %v1173_v42, %s1268_s24 }
 0xd85   :  { %v576_v43 = vpop.permute.xlu0 %575 }
 0xd86   :  { %v578_v44 = vmul.f32 %v1171_v36, %v576_v43 }
 0xd88   :  { %v586_v45 = vrot.slane %v578_v44, %v1358_v25 }
 0xd8a   :  { %587 = vrot.lane.b32.xlu1 %v586_v45, %s1269_s25 }
 0xdfc   :  { %v588_v46 = vpop.permute.xlu1 %587 }
 0xdfd   :  { %1050 = vmatmul.mubr.msk.f32.vlgmr.msra.gmra.mrb[4].mxu1 %vm52_vm1, %v588_v46 }
 0xdfe   :  { %1118 = vmatpush3.bf16.msra.mxu1 %v1336_v5  ;;  %1071 = vmatprep.mubr.msk.f32.mxu1 %vm1266_vm0, %v1267_v1 }
 0xdff   :  { %1119 = vmatprep.subr.bf16.mxu1 %v1265_v0 }
 0xe02   :  { %1121 = vmatpush3.bf16.msra.mxu1 %v1339_v7 }
 0xed0   :  { %v657_v48 = vpop.f32.mrb[4].mxu1 }
 0xed1   :  { %v661_v49 = vadd.f32 %v657_v48, %v581_v47  ;;  %v1051_v50 = vpop.f32.mrb[5].mxu1 }
 0xed3   :  { %1174 = vtanh.f32 %v661_v49  ;;  %v939_v52 = vmul.f32 -1.442695, %v661_v49 }
 0xed5   :  { %1176 = vpow2.f32 %v939_v52 }
 0xedd   :  { %v1175_v51 = vpop.eup %1174 }
 0xede   :  { %671 = vrot.lane.b32.xlu0 %v1175_v51, %s1268_s24 }
 0xedf   :  { %v1177_v5 = vpop.eup %1176 }
 0xee0   :  { %v665_v53 = vadd.f32 1.0, %v1177_v5 }
 0xee2   :  { %1178 = vrcp.f32 %v665_v53 }
 0xeec   :  { %v1179_v1 = vpop.eup %1178 }
 0xeed   :  { %v669_v7 = vmul.f32 %v1179_v1, %v572_v41 }
 0xf50   :  { %v672_v54 = vpop.permute.xlu0 %671 }
 0xf51   :  { %v674_v0 = vmul.f32 %v1179_v1, %v672_v54 }
 0xf53   :  { %676 = vrot.lane.b32.xlu1 %v674_v0, %s1269_s25 }
 0xfc5   :  { %v677_v55 = vpop.permute.xlu1 %676 }
 0xfc6   :  { %v679_v56 = vadd.f32 %v677_v55, %v669_v7 }
 0xfc8   :  { %1180 = vtanh.f32 %v679_v56 }
 0xfd2   :  { %v1181_v57 = vpop.eup %1180 }
 0xfd3   :  { %682 = vrot.lane.b32.xlu0 %v1181_v57, %s1268_s24 }
0x1045   :  { %v683_v58 = vpop.permute.xlu0 %682 }
0x1046   :  { %v685_v59 = vmul.f32 %v1179_v1, %v683_v58 }
0x1048   :  { %v693_v60 = vrot.slane %v685_v59, %v1358_v25 }
0x104a   :  { %694 = vrot.lane.b32.xlu1 %v693_v60, %s1269_s25 }
0x10bc   :  { %v695_v61 = vpop.permute.xlu1 %694 }
0x10bd   :  { %1061 = vmatmul.mubr.msk.f32.vlgmr.msra.gmra.mrb[6].mxu0 %vm52_vm1, %v695_v61 }
0x1190   :  { %v764_v63 = vpop.f32.mrb[6].mxu0 }
0x1191   :  { %v768_v2 = vadd.f32 %v764_v63, %v688_v62  ;;  %v1062_v3 = vpop.f32.mrb[7].mxu0 }
0x1193   :  { %1182 = vtanh.f32 %v768_v2  ;;  %v942_v6 = vmul.f32 -1.442695, %v768_v2 }
0x1195   :  { %1184 = vpow2.f32 %v942_v6 }
0x119d   :  { %v1183_v4 = vpop.eup %1182 }
0x119e   :  { %778 = vrot.lane.b32.xlu0 %v1183_v4, %s1268_s24 }
0x119f   :  { %v1185_v8 = vpop.eup %1184 }
0x11a0   :  { %v772_v9 = vadd.f32 1.0, %v1185_v8 }
0x11a2   :  { %1186 = vrcp.f32 %v772_v9 }
0x11ac   :  { %v1187_v10 = vpop.eup %1186 }
0x11ad   :  { %v776_v13 = vmul.f32 %v1187_v10, %v679_v56 }
0x1210   :  { %v779_v11 = vpop.permute.xlu0 %778 }
0x1211   :  { %v781_v12 = vmul.f32 %v1187_v10, %v779_v11 }
0x1213   :  { %783 = vrot.lane.b32.xlu1 %v781_v12, %s1269_s25 }
0x1285   :  { %v784_v14 = vpop.permute.xlu1 %783 }
0x1286   :  { %v786_v15 = vadd.f32 %v784_v14, %v776_v13 }
0x1288   :  { %1188 = vtanh.f32 %v786_v15 }
0x1292   :  { %v1189_v16 = vpop.eup %1188 }
0x1293   :  { %789 = vrot.lane.b32.xlu0 %v1189_v16, %s1268_s24 }
0x1305   :  { %v790_v17 = vpop.permute.xlu0 %789 }
0x1306   :  { %v792_v18 = vmul.f32 %v1187_v10, %v790_v17 }
0x1308   :  { %v800_v19 = vrot.slane %v792_v18, %v1358_v25 }
0x130a   :  { %801 = vrot.lane.b32.xlu1 %v800_v19, %s1269_s25 }
0x137c   :  { %v802_v20 = vpop.permute.xlu1 %801 }
0x137d   :  { %1072 = vmatmul.mubr.msk.f32.vlgmr.msra.gmra.mrb[6].mxu1 %vm52_vm1, %v802_v20 }
0x1450   :  { %v871_v22 = vpop.f32.mrb[6].mxu1 }
0x1451   :  { %v875_v23 = vadd.f32 %v871_v22, %v795_v21  ;;  %v1073_v24 = vpop.f32.mrb[7].mxu1 }
0x1453   :  { %1190 = vtanh.f32 %v875_v23  ;;  %v945_v27 = vmul.f32 -1.442695, %v875_v23 }
0x1455   :  { %1192 = vpow2.f32 %v945_v27 }
0x145d   :  { %v1191_v26 = vpop.eup %1190 }
0x145e   :  { %885 = vrot.lane.b32.xlu0 %v1191_v26, %s1268_s24 }
0x145f   :  { %v1193_v28 = vpop.eup %1192 }
0x1460   :  { %v879_v29 = vadd.f32 1.0, %v1193_v28 }
0x1462   :  { %1194 = vrcp.f32 %v879_v29 }
0x146c   :  { %v1195_v30 = vpop.eup %1194 }
0x146d   :  { %v883_v33 = vmul.f32 %v1195_v30, %v786_v15 }
0x14d0   :  { %v886_v31 = vpop.permute.xlu0 %885 }
0x14d1   :  { %v888_v32 = vmul.f32 %v1195_v30, %v886_v31 }
0x14d3   :  { %890 = vrot.lane.b32.xlu1 %v888_v32, %s1269_s25 }
0x1545   :  { %v891_v34 = vpop.permute.xlu1 %890 }
0x1546   :  { %v893_v35 = vadd.f32 %v891_v34, %v883_v33 }
0x1548   :  { %1196 = vtanh.f32 %v893_v35 }
0x1552   :  { %v1197_v36 = vpop.eup %1196 }
0x1553   :  { %896 = vrot.lane.b32.xlu0 %v1197_v36, %s1268_s24 }
0x15c5   :  { %v897_v37 = vpop.permute.xlu0 %896 }
0x15c6   :  { %v899_v38 = vmul.f32 %v1195_v30, %v897_v37 }
0x15c8   :  { %v904_v39 = vrot.slane %v899_v38, %v1358_v25 }
0x15ca   :  { %905 = vrot.lane.b32.xlu1 %v904_v39, %s1269_s25 }
0x163c   :  { %v906_v40 = vpop.permute.xlu1 %905 }
0x163d   :  { %909 = vst.msk [vmem:[%s1438_s3] sm:$0x1] %vm908_vm2, %v906_v40 }
0x163e   :  { %914 = vsyncpa [#allocation5], 1 }
0x163f   :  { %915 = vsyncpa [#allocation7], 1 }

</bundles_post_ra>
